<compile_context>
chip_gen: v6e
topology: v6e:2x2x1
jax: 0.10.0
libtpu: 0.0.40
codegen_flags: <defaults>
</compile_context>

<pallas_src>
import functools

import jax
import jax.numpy as jnp
from jax.experimental import pallas as pl
from jax.experimental.pallas import tpu as pltpu


_PHASES = ((0, 0), (0, 1), (1, 0), (1, 1))   # output parity (a, b), p = 2a + b
_TAPS = ((0, 0), (0, 1), (1, 0), (1, 1))     # 2x2 sub-kernel tap (r, s), t = 2r + s
_SHIFTS9 = tuple((dr, dc) for dr in (-1, 0, 1) for dc in (-1, 0, 1))  # k = 3(dr+1)+(dc+1)


def _round_up(x, m):
    return (x + m - 1) // m * m


def _up_kernel(x_ref, w_ref, o_ref, xpad_ref, xs_ref, *,
               H, W, C, Cp, Coutp, count, n_extra, eps, neg_slope, final,
               fuse_all):
    """One batch element per grid step.

    x_ref   : (1, C, H*W)            bf16  flattened NCHW input
    w_ref   : (4*Coutp, 9*Cp)        bf16  if fuse_all, else (4, Coutp, 4*Cp)
    o_ref   : (1, 4*Coutp, H*W)      f32   phase-major, channel-major output
    xpad_ref: (Cp, H*W + 2*(W+1))    bf16  scratch: zero-margined flat input
    xs_ref  : ({9|4}*Cp, H*W)        bf16  scratch: K-stacked shifted operand
    """
    HW = H * W
    margin = W + 1
    L = HW + 2 * margin
    dt = xpad_ref.dtype

    # ---- zero-margined flat input in VMEM (replaces the wrapper pad) -------
    # Everything read below is rewritten here each step (no cross-step scratch
    # state), so the batch grid axis is safely "parallel" on multi-core parts.
    zmargin = jnp.zeros((Cp, margin), dt)
    xpad_ref[:, pl.ds(0, margin)] = zmargin
    xpad_ref[:, pl.ds(margin + HW, margin)] = zmargin
    if Cp > C:
        xpad_ref[pl.ds(C, Cp - C), :] = jnp.zeros((Cp - C, L), dt)
    xpad_ref[pl.ds(0, C), pl.ds(margin, HW)] = x_ref[0]

    # Column-validity lane masks (only the column shift can wrap into the
    # neighbouring row of the flat layout; row over/underflow lands in the
    # zero margin automatically).  Hoisted once; the selects fuse into the
    # stack-building copies below.
    col = jax.lax.broadcasted_iota(jnp.int32, (1, HW), 1) % W
    ok_plus = jnp.broadcast_to(col < (W - 1), (Cp, HW))   # reading column j+1 ok
    ok_minus = jnp.broadcast_to(col >= 1, (Cp, HW))       # reading column j-1 ok

    def shifted(dr, dc):
        v = xpad_ref[:, pl.ds(margin + dr * W + dc, HW)]  # (Cp, HW)
        if dc == 1:
            v = jnp.where(ok_plus, v, jnp.zeros_like(v))
        elif dc == -1:
            v = jnp.where(ok_minus, v, jnp.zeros_like(v))
        return v

    # ---- transpose-conv: sub-pixel phases as wide-K MXU matmuls ------------
    # Unnormalized results are staged straight into o_ref (VMEM), so no f32
    # phase accumulators stay live across phases; `ssum` is the only carry.
    ssum = jnp.zeros((Coutp, 1), jnp.float32)
    if fuse_all:
        # Single matmul for all 4 phases x 4 taps (zero weight blocks for the
        # unused (phase, shift) pairs).
        for k, (dr, dc) in enumerate(_SHIFTS9):
            xs_ref[pl.ds(k * Cp, Cp), :] = shifted(dr, dc)
        y_all = jnp.dot(w_ref[...], xs_ref[...],
                        preferred_element_type=jnp.float32)      # (4*Coutp, HW)
        o_ref[0] = y_all
        row_sum = jnp.sum(y_all, axis=1, keepdims=True)          # (4*Coutp, 1)
        for p in range(4):
            ssum = ssum + row_sum[p * Coutp:(p + 1) * Coutp]
    else:
        # One matmul per phase, contraction K = 4*Cp (taps K-stacked).
        for p, (a, b) in enumerate(_PHASES):
            for t, (r, s) in enumerate(_TAPS):
                xs_ref[pl.ds(t * Cp, Cp), :] = shifted(a + r - 1, b + s - 1)
            y = jnp.dot(w_ref[p], xs_ref[...],
                        preferred_element_type=jnp.float32)      # (Coutp, HW)
            o_ref[0, pl.ds(p * Coutp, Coutp), :] = y
            ssum = ssum + jnp.sum(y, axis=1, keepdims=True)

    # ---- InstanceNorm2d (affine=False) statistics: exact two-pass ----------
    # mean from the matmul values above; centered sum-of-squares from a VMEM
    # re-read of the staged phases (no E[y^2]-mean^2 cancellation).
    # output_padding=1 note: the bottom/right output row/column that the
    # wrapper crops away are *exactly zero* here (no bias is applied before
    # the norm), so their centered contribution is n_extra * mean^2 and is
    # subtracted to keep the statistics exact over the cropped Hout*Wout
    # elements.  Do not add a bias / affine term pre-norm without revisiting.
    inv_n = 1.0 / count
    mean = ssum * inv_n                                           # (Coutp, 1)
    ssq = jnp.zeros((Coutp, 1), jnp.float32)
    for p in range(4):
        d = o_ref[0, pl.ds(p * Coutp, Coutp), :] - mean
        ssq = ssq + jnp.sum(d * d, axis=1, keepdims=True)
    var = jnp.maximum((ssq - n_extra * (mean * mean)) * inv_n, 0.0)
    inv_std = jax.lax.rsqrt(var + eps)

    # ---- normalize + activation, overwrite the staged phases in place ------
    for p in range(4):
        yn = (o_ref[0, pl.ds(p * Coutp, Coutp), :] - mean) * inv_std
        if final:
            act = jnp.tanh(yn)
        else:
            act = jnp.where(yn >= 0, yn, neg_slope * yn)          # LeakyReLU(0.2)
        o_ref[0, pl.ds(p * Coutp, Coutp), :] = act


def up_pallas(x1, x2, w_t, b=None, *, concat=True, final=False, output_pad=0,
              fuse_all=None):
    """Forward pass of `up`.  x1, x2: NCHW.  w_t: ConvTranspose2d weight
    (in_ch, out_ch, 4, 4).  b: ConvTranspose2d bias (ignored: a per-channel
    bias is a no-op before the non-affine InstanceNorm that follows)."""
    del b
    if concat:
        diffY = x2.shape[2] - x1.shape[2]
        diffX = x2.shape[3] - x1.shape[3]
        x1 = jnp.pad(x1, ((0, 0), (0, 0),
                          (diffY // 2, diffY - diffY // 2),
                          (diffX // 2, diffX - diffX // 2)))
        x = jnp.concatenate([x2, x1], axis=1)
    else:
        x = x1

    out_dtype = x.dtype
    N, C, H, W = x.shape
    Cin, Cout, KH, KW = w_t.shape
    assert C == Cin, (C, Cin)
    assert (KH, KW) == (4, 4)
    assert output_pad in (0, 1)
    Hout, Wout = 2 * H + output_pad, 2 * W + output_pad

    # output_padding=1 == zero-pad the input by one row/col (bottom/right),
    # run the output_padding=0 kernel, crop the result.  Only the final layer
    # uses this; its tiny wrapper pad is kept, the per-layer margin pad is not.
    if output_pad:
        x = jnp.pad(x, ((0, 0), (0, 0), (0, output_pad), (0, output_pad)))
    Hk, Wk = H + output_pad, W + output_pad
    HWk = Hk * Wk
    margin = Wk + 1
    L = HWk + 2 * margin

    # bf16 staging halves input DMA / VMEM; DEFAULT MXU ingests bf16 anyway.
    # (In a full network this cast fuses into the producing layer.)
    cdtype = jnp.bfloat16
    Cp = _round_up(C, 16)        # bf16 sublane packing -> aligned K-stack blocks
    Coutp = _round_up(Cout, 8)   # f32 sublane packing for the output phase rows

    # All 16 taps fuse into a single MXU pass when the stacked K is small.
    if fuse_all is None:
        fuse_all = 9 * Cp <= 256
    n_shift = 9 if fuse_all else 4

    # Sub-pixel weight packing (zero-padded to Cp / Coutp):
    #   phase (a,b), tap (r,s):  W[(a,b),(r,s)] = w_t[:, :, 3-a-2r, 3-b-2s]^T,
    #   paired with the input shifted by (dr, dc) = (a+r-1, b+s-1).
    w32 = w_t.astype(jnp.float32)
    if fuse_all:
        wk = jnp.zeros((4 * Coutp, 9 * Cp), jnp.float32)
        for a, bb in _PHASES:
            p = 2 * a + bb
            for r, s in _TAPS:
                dr, dc = a + r - 1, bb + s - 1
                k = 3 * (dr + 1) + (dc + 1)
                blk = jnp.transpose(w32[:, :, 3 - a - 2 * r, 3 - bb - 2 * s])
                wk = wk.at[p * Coutp:p * Coutp + Cout, k * Cp:k * Cp + C].set(blk)
    else:
        wk = jnp.zeros((4, Coutp, 4 * Cp), jnp.float32)
        for a, bb in _PHASES:
            p = 2 * a + bb
            for r, s in _TAPS:
                t = 2 * r + s
                blk = jnp.transpose(w32[:, :, 3 - a - 2 * r, 3 - bb - 2 * s])
                wk = wk.at[p, :Cout, t * Cp:t * Cp + C].set(blk)
    wk = wk.astype(cdtype)

    # Flatten spatial (free for contiguous NCHW); the zero margin is built
    # inside the kernel, not with a wrapper-side HBM pad.
    x_flat = x.reshape(N, C, HWk).astype(cdtype)

    kernel = functools.partial(
        _up_kernel, H=Hk, W=Wk, C=C, Cp=Cp, Coutp=Coutp,
        count=float(Hout * Wout), n_extra=float(4 * HWk - Hout * Wout),
        eps=1e-5, neg_slope=0.2, final=final, fuse_all=fuse_all)

    # Per-step VMEM footprint -> scoped limit (floor 32 MiB, cap below the
    # device's physical VMEM; v7x has only 64 MiB per TensorCore).
    in_blk = C * HWk * 2
    w_bytes = int(wk.size) * 2
    out_blk = 4 * Coutp * HWk * 4
    scratch_bytes = Cp * L * 2 + n_shift * Cp * HWk * 2
    vmem_est = 2 * in_blk + 2 * w_bytes + 2 * out_blk + scratch_bytes
    phys_vmem = 64 * 2 ** 20
    try:
        phys_vmem = int(pltpu.get_tpu_info().vmem_capacity_bytes)
    except Exception:
        pass
    vmem_limit = int(min(max(2 * vmem_est, 32 * 2 ** 20), int(0.9 * phys_vmem)))

    cost = pl.CostEstimate(
        flops=2 * N * 4 * Coutp * n_shift * Cp * HWk,
        transcendentals=N * Coutp + (N * 4 * Coutp * HWk if final else 0),
        bytes_accessed=N * in_blk + w_bytes + N * out_blk)

    # TODO(synk): for very large decoder layers whose per-image footprint
    # exceeds the VMEM budget above, add a Cout grid axis (instance-norm stats
    # are per-channel, so the split is exact) and/or a two-pass HW tiling;
    # current design holds one image per grid step.
    out = pl.pallas_call(
        kernel,
        out_shape=jax.ShapeDtypeStruct((N, 4 * Coutp, HWk), jnp.float32),
        grid_spec=pltpu.PrefetchScalarGridSpec(
            num_scalar_prefetch=0,
            grid=(N,),
            in_specs=[
                pl.BlockSpec((1, C, HWk), lambda n: (n, 0, 0)),
                pl.BlockSpec(wk.shape, lambda n: (0,) * wk.ndim),
            ],
            out_specs=pl.BlockSpec((1, 4 * Coutp, HWk), lambda n: (n, 0, 0)),
            scratch_shapes=[
                pltpu.VMEM((Cp, L), cdtype),
                pltpu.VMEM((n_shift * Cp, HWk), cdtype),
            ]),
        compiler_params=pltpu.CompilerParams(
            dimension_semantics=("parallel",),
            vmem_limit_bytes=vmem_limit),
        cost_estimate=cost,
    )(x_flat, wk)

    # Interleave the four parity phases back into NCHW (and drop the padded
    # output channels).  TODO(synk): this transpose is one extra HBM round
    # trip of the output; fold it into the consumer, or interleave the column
    # phase in-kernel, if this layer ever shows up as memory bound.
    out = out.reshape(N, 2, 2, Coutp, Hk, Wk)[:, :, :, :Cout]
    out = out.transpose(0, 3, 4, 1, 5, 2).reshape(N, Cout, 2 * Hk, 2 * Wk)
    if output_pad:
        out = out[:, :, :Hout, :Wout]
    return out.astype(out_dtype)


def ref_forward(x1, x2, w_t, b, *, concat=True, final=False, output_pad=0):
    """Pure-JAX reference following the direct ConvTranspose2d scatter definition."""
    if concat:
        diffY = x2.shape[2] - x1.shape[2]
        diffX = x2.shape[3] - x1.shape[3]
        x1 = jnp.pad(x1, ((0, 0), (0, 0),
                          (diffY // 2, diffY - diffY // 2),
                          (diffX // 2, diffX - diffX // 2)))
        x = jnp.concatenate([x2, x1], axis=1)
    else:
        x = x1
    N, C, H, W = x.shape
    Cout = w_t.shape[1]
    Hout, Wout = 2 * H + output_pad, 2 * W + output_pad
    contrib = jnp.einsum('nchw,cokl->noklhw', x, w_t, precision='highest')
    full = jnp.zeros((N, Cout, 2 * H + 2 + output_pad, 2 * W + 2 + output_pad),
                     x.dtype)
    for kh in range(4):
        for kw in range(4):
            full = full.at[:, :, kh:kh + 2 * H:2, kw:kw + 2 * W:2].add(
                contrib[:, :, kh, kw])
    y = full[:, :, 1:1 + Hout, 1:1 + Wout] + b[None, :, None, None]
    mean = y.mean(axis=(2, 3), keepdims=True)
    var = ((y - mean) ** 2).mean(axis=(2, 3), keepdims=True)
    yn = (y - mean) / jnp.sqrt(var + 1e-5)
    return jnp.tanh(yn) if final else jnp.where(yn >= 0, yn, 0.2 * yn)


if __name__ == "__main__":
    key = jax.random.PRNGKey(0)
    k1, k2, k3, k4, k5 = jax.random.split(key, 5)

    # skip-connection style inputs; in_ch = C1 + C2 after concat
    N, C1, C2, H, W = 2, 4, 4, 16, 16
    in_ch, out_ch = C1 + C2, 4

    x1 = jax.random.normal(k1, (N, C1, H, W), jnp.float32)
    x2 = jax.random.normal(k2, (N, C2, H, W), jnp.float32)
    w_t = jax.random.normal(k3, (in_ch, out_ch, 4, 4), jnp.float32) * 0.1
    b = jax.random.normal(k4, (out_ch,), jnp.float32) * 0.1

    # main path: concat + LeakyReLU(0.2), output_padding=0.
    # bf16 staging + DEFAULT (bf16-pass) MXU vs. f32-'highest' reference -> 3e-2 tol.
    ref = ref_forward(x1, x2, w_t, b, concat=True, final=False, output_pad=0)
    for fuse in (True, False):   # exercise both MXU fusion paths
        out = jax.block_until_ready(
            up_pallas(x1, x2, w_t, b, concat=True, final=False, output_pad=0,
                      fuse_all=fuse))
        assert out.shape == (N, out_ch, 2 * H, 2 * W), out.shape
        err = float(jnp.max(jnp.abs(out - ref)))
        assert jnp.allclose(out, ref, atol=3e-2, rtol=3e-2), (fuse, err)

    # final path: no concat, Tanh, output_padding=1
    w_t2 = jax.random.normal(k5, (C1, out_ch, 4, 4), jnp.float32) * 0.1
    out2 = jax.block_until_ready(
        up_pallas(x1, x2, w_t2, b, concat=False, final=True, output_pad=1))
    ref2 = ref_forward(x1, x2, w_t2, b, concat=False, final=True, output_pad=1)
    assert out2.shape == (N, out_ch, 2 * H + 1, 2 * W + 1), out2.shape
    err2 = float(jnp.max(jnp.abs(out2 - ref2)))
    assert jnp.allclose(out2, ref2, atol=3e-2, rtol=3e-2), err2

    print("KERNEL_OK")
</pallas_src>

<mosaic_0001>
module attributes {stable_mosaic.version = 11 : i64} {
  func.func @_up_kernel(%arg0: i32, %arg1: memref<1x8x256xbf16, #tpu.memory_space<vmem>>, %arg2: memref<32x144xbf16, #tpu.memory_space<vmem>>, %arg3: memref<1x32x256xf32, #tpu.memory_space<vmem>>, %arg4: memref<16x290xbf16, #tpu.memory_space<vmem>>, %arg5: memref<144x256xbf16, #tpu.memory_space<vmem>>) attributes {dimension_semantics = [#tpu.dimension_semantics<parallel>], iteration_bounds = array<i64: 2>, scalar_prefetch = 0 : i64, scratch_operands = 2 : i64, tpu.core_type = #tpu.core_type<tc>, window_params = [{transform_indices = @transform_0, window_bounds = array<i64: 1, 8, 256>}, {pipeline_mode = #tpu.pipeline_mode<synchronous>, transform_indices = @transform_1, window_bounds = array<i64: 32, 144>}, {transform_indices = @transform_2, window_bounds = array<i64: 1, 32, 256>}]} {
    %cst = arith.constant 0.000000e+00 : bf16
    %0 = vector.broadcast %cst : bf16 to vector<16x17xbf16>
    %c0 = arith.constant 0 : index
    %c0_0 = arith.constant 0 : index
    %1 = vector.load %arg4[%c0, %c0_0] : memref<16x290xbf16, #tpu.memory_space<vmem>>, vector<16x17xbf16>
    tpu.vector_store %arg4[%c0, %c0_0], %0 {strides = array<i32>} : memref<16x290xbf16, #tpu.memory_space<vmem>>, vector<16x17xbf16>,
    %c0_1 = arith.constant 0 : index
    %c273 = arith.constant 273 : index
    %2 = vector.load %arg4[%c0_1, %c273] : memref<16x290xbf16, #tpu.memory_space<vmem>>, vector<16x17xbf16>
    tpu.vector_store %arg4[%c0_1, %c273], %0 {strides = array<i32>} : memref<16x290xbf16, #tpu.memory_space<vmem>>, vector<16x17xbf16>,
    %cst_2 = arith.constant 0.000000e+00 : bf16
    %3 = vector.broadcast %cst_2 : bf16 to vector<8x290xbf16>
    %c8 = arith.constant 8 : index
    %c0_3 = arith.constant 0 : index
    %4 = vector.load %arg4[%c8, %c0_3] : memref<16x290xbf16, #tpu.memory_space<vmem>>, vector<8x290xbf16>
    tpu.vector_store %arg4[%c8, %c0_3], %3 {strides = array<i32>} : memref<16x290xbf16, #tpu.memory_space<vmem>>, vector<8x290xbf16>,
    %c0_4 = arith.constant 0 : index
    %c0_5 = arith.constant 0 : index
    %c0_6 = arith.constant 0 : index
    %5 = vector.load %arg1[%c0_4, %c0_5, %c0_6] : memref<1x8x256xbf16, #tpu.memory_space<vmem>>, vector<1x8x256xbf16>
    %6 = vector.shape_cast %5 : vector<1x8x256xbf16> to vector<8x256xbf16>
    %c0_7 = arith.constant 0 : index
    %c17 = arith.constant 17 : index
    %7 = vector.load %arg4[%c0_7, %c17] : memref<16x290xbf16, #tpu.memory_space<vmem>>, vector<8x256xbf16>
    tpu.vector_store %arg4[%c0_7, %c17], %6 {strides = array<i32>} : memref<16x290xbf16, #tpu.memory_space<vmem>>, vector<8x256xbf16>,
    %8 = tpu.iota {dimensions = array<i32: 1>} : vector<1x256xi32>
    %c16_i32 = arith.constant 16 : i32
    %c0_i32 = arith.constant 0 : i32
    %9 = arith.cmpi eq, %c16_i32, %c0_i32 : i32
    %c1_i32 = arith.constant 1 : i32
    %10 = arith.select %9, %c1_i32, %c16_i32 : i32
    %11 = vector.broadcast %10 : i32 to vector<1x256xi32>
    %12 = arith.remsi %8, %11 : vector<1x256xi32>
    %c0_i32_8 = arith.constant 0 : i32
    %13 = vector.broadcast %c0_i32_8 : i32 to vector<1x256xi32>
    %14 = arith.cmpi ne, %12, %13 : vector<1x256xi32>
    %c0_i32_9 = arith.constant 0 : i32
    %15 = vector.broadcast %c0_i32_9 : i32 to vector<1x256xi32>
    %16 = arith.cmpi slt, %12, %15 : vector<1x256xi32>
    %c0_i32_10 = arith.constant 0 : i32
    %17 = arith.cmpi slt, %10, %c0_i32_10 : i32
    %18 = vector.broadcast %17 : i1 to vector<1x256xi1>
    %19 = vector.broadcast %18 : vector<1x256xi1> to vector<1x256xi1>
    %20 = arith.xori %16, %19 : vector<1x256xi1>
    %21 = arith.andi %20, %14 : vector<1x256xi1>
    %22 = vector.broadcast %10 : i32 to vector<1x256xi32>
    %23 = arith.addi %12, %22 : vector<1x256xi32>
    %24 = arith.select %21, %23, %12 : vector<1x256xi1>, vector<1x256xi32>
    %c15_i32 = arith.constant 15 : i32
    %25 = vector.broadcast %c15_i32 : i32 to vector<1x256xi32>
    %26 = arith.cmpi slt, %24, %25 : vector<1x256xi32>
    %27 = vector.shape_cast %26 : vector<1x256xi1> to vector<1x256xi1>
    %28 = vector.broadcast %27 : vector<1x256xi1> to vector<16x256xi1>
    %c1_i32_11 = arith.constant 1 : i32
    %29 = vector.broadcast %c1_i32_11 : i32 to vector<1x256xi32>
    %30 = arith.cmpi sge, %24, %29 : vector<1x256xi32>
    %31 = vector.shape_cast %30 : vector<1x256xi1> to vector<1x256xi1>
    %32 = vector.broadcast %31 : vector<1x256xi1> to vector<16x256xi1>
    %cst_12 = arith.constant 0.000000e+00 : f32
    %33 = vector.broadcast %cst_12 : f32 to vector<8x1xf32>
    %c0_13 = arith.constant 0 : index
    %c0_14 = arith.constant 0 : index
    %34 = vector.load %arg4[%c0_13, %c0_14] : memref<16x290xbf16, #tpu.memory_space<vmem>>, vector<16x256xbf16>
    %cst_15 = arith.constant 0.000000e+00 : bf16
    %35 = vector.broadcast %cst_15 : bf16 to vector<16x256xbf16>
    %36 = arith.select %32, %34, %35 : vector<16x256xi1>, vector<16x256xbf16>
    %c0_16 = arith.constant 0 : index
    %c0_17 = arith.constant 0 : index
    %37 = vector.load %arg5[%c0_16, %c0_17] : memref<144x256xbf16, #tpu.memory_space<vmem>>, vector<16x256xbf16>
    tpu.vector_store %arg5[%c0_16, %c0_17], %36 {strides = array<i32>} : memref<144x256xbf16, #tpu.memory_space<vmem>>, vector<16x256xbf16>,
    %c0_18 = arith.constant 0 : index
    %c1 = arith.constant 1 : index
    %38 = vector.load %arg4[%c0_18, %c1] : memref<16x290xbf16, #tpu.memory_space<vmem>>, vector<16x256xbf16>
    %c16 = arith.constant 16 : index
    %c0_19 = arith.constant 0 : index
    %39 = vector.load %arg5[%c16, %c0_19] : memref<144x256xbf16, #tpu.memory_space<vmem>>, vector<16x256xbf16>
    tpu.vector_store %arg5[%c16, %c0_19], %38 {strides = array<i32>} : memref<144x256xbf16, #tpu.memory_space<vmem>>, vector<16x256xbf16>,
    %c0_20 = arith.constant 0 : index
    %c2 = arith.constant 2 : index
    %40 = vector.load %arg4[%c0_20, %c2] : memref<16x290xbf16, #tpu.memory_space<vmem>>, vector<16x256xbf16>
    %cst_21 = arith.constant 0.000000e+00 : bf16
    %41 = vector.broadcast %cst_21 : bf16 to vector<16x256xbf16>
    %42 = arith.select %28, %40, %41 : vector<16x256xi1>, vector<16x256xbf16>
    %c32 = arith.constant 32 : index
    %c0_22 = arith.constant 0 : index
    %43 = vector.load %arg5[%c32, %c0_22] : memref<144x256xbf16, #tpu.memory_space<vmem>>, vector<16x256xbf16>
    tpu.vector_store %arg5[%c32, %c0_22], %42 {strides = array<i32>} : memref<144x256xbf16, #tpu.memory_space<vmem>>, vector<16x256xbf16>,
    %c0_23 = arith.constant 0 : index
    %c16_24 = arith.constant 16 : index
    %44 = vector.load %arg4[%c0_23, %c16_24] : memref<16x290xbf16, #tpu.memory_space<vmem>>, vector<16x256xbf16>
    %cst_25 = arith.constant 0.000000e+00 : bf16
    %45 = vector.broadcast %cst_25 : bf16 to vector<16x256xbf16>
    %46 = arith.select %32, %44, %45 : vector<16x256xi1>, vector<16x256xbf16>
    %c48 = arith.constant 48 : index
    %c0_26 = arith.constant 0 : index
    %47 = vector.load %arg5[%c48, %c0_26] : memref<144x256xbf16, #tpu.memory_space<vmem>>, vector<16x256xbf16>
    tpu.vector_store %arg5[%c48, %c0_26], %46 {strides = array<i32>} : memref<144x256xbf16, #tpu.memory_space<vmem>>, vector<16x256xbf16>,
    %c0_27 = arith.constant 0 : index
    %c17_28 = arith.constant 17 : index
    %48 = vector.load %arg4[%c0_27, %c17_28] : memref<16x290xbf16, #tpu.memory_space<vmem>>, vector<16x256xbf16>
    %c64 = arith.constant 64 : index
    %c0_29 = arith.constant 0 : index
    %49 = vector.load %arg5[%c64, %c0_29] : memref<144x256xbf16, #tpu.memory_space<vmem>>, vector<16x256xbf16>
    tpu.vector_store %arg5[%c64, %c0_29], %48 {strides = array<i32>} : memref<144x256xbf16, #tpu.memory_space<vmem>>, vector<16x256xbf16>,
    %c0_30 = arith.constant 0 : index
    %c18 = arith.constant 18 : index
    %50 = vector.load %arg4[%c0_30, %c18] : memref<16x290xbf16, #tpu.memory_space<vmem>>, vector<16x256xbf16>
    %cst_31 = arith.constant 0.000000e+00 : bf16
    %51 = vector.broadcast %cst_31 : bf16 to vector<16x256xbf16>
    %52 = arith.select %28, %50, %51 : vector<16x256xi1>, vector<16x256xbf16>
    %c80 = arith.constant 80 : index
    %c0_32 = arith.constant 0 : index
    %53 = vector.load %arg5[%c80, %c0_32] : memref<144x256xbf16, #tpu.memory_space<vmem>>, vector<16x256xbf16>
    tpu.vector_store %arg5[%c80, %c0_32], %52 {strides = array<i32>} : memref<144x256xbf16, #tpu.memory_space<vmem>>, vector<16x256xbf16>,
    %c0_33 = arith.constant 0 : index
    %c32_34 = arith.constant 32 : index
    %54 = vector.load %arg4[%c0_33, %c32_34] : memref<16x290xbf16, #tpu.memory_space<vmem>>, vector<16x256xbf16>
    %cst_35 = arith.constant 0.000000e+00 : bf16
    %55 = vector.broadcast %cst_35 : bf16 to vector<16x256xbf16>
    %56 = arith.select %32, %54, %55 : vector<16x256xi1>, vector<16x256xbf16>
    %c96 = arith.constant 96 : index
    %c0_36 = arith.constant 0 : index
    %57 = vector.load %arg5[%c96, %c0_36] : memref<144x256xbf16, #tpu.memory_space<vmem>>, vector<16x256xbf16>
    tpu.vector_store %arg5[%c96, %c0_36], %56 {strides = array<i32>} : memref<144x256xbf16, #tpu.memory_space<vmem>>, vector<16x256xbf16>,
    %c0_37 = arith.constant 0 : index
    %c33 = arith.constant 33 : index
    %58 = vector.load %arg4[%c0_37, %c33] : memref<16x290xbf16, #tpu.memory_space<vmem>>, vector<16x256xbf16>
    %c112 = arith.constant 112 : index
    %c0_38 = arith.constant 0 : index
    %59 = vector.load %arg5[%c112, %c0_38] : memref<144x256xbf16, #tpu.memory_space<vmem>>, vector<16x256xbf16>
    tpu.vector_store %arg5[%c112, %c0_38], %58 {strides = array<i32>} : memref<144x256xbf16, #tpu.memory_space<vmem>>, vector<16x256xbf16>,
    %c0_39 = arith.constant 0 : index
    %c34 = arith.constant 34 : index
    %60 = vector.load %arg4[%c0_39, %c34] : memref<16x290xbf16, #tpu.memory_space<vmem>>, vector<16x256xbf16>
    %cst_40 = arith.constant 0.000000e+00 : bf16
    %61 = vector.broadcast %cst_40 : bf16 to vector<16x256xbf16>
    %62 = arith.select %28, %60, %61 : vector<16x256xi1>, vector<16x256xbf16>
    %c128 = arith.constant 128 : index
    %c0_41 = arith.constant 0 : index
    %63 = vector.load %arg5[%c128, %c0_41] : memref<144x256xbf16, #tpu.memory_space<vmem>>, vector<16x256xbf16>
    tpu.vector_store %arg5[%c128, %c0_41], %62 {strides = array<i32>} : memref<144x256xbf16, #tpu.memory_space<vmem>>, vector<16x256xbf16>,
    %c0_42 = arith.constant 0 : index
    %c0_43 = arith.constant 0 : index
    %64 = vector.load %arg2[%c0_42, %c0_43] : memref<32x144xbf16, #tpu.memory_space<vmem>>, vector<32x144xbf16>
    %c0_44 = arith.constant 0 : index
    %c0_45 = arith.constant 0 : index
    %65 = vector.load %arg5[%c0_44, %c0_45] : memref<144x256xbf16, #tpu.memory_space<vmem>>, vector<144x256xbf16>
    %cst_46 = arith.constant dense<0.000000e+00> : vector<32x256xf32>
    %66 = tpu.matmul %64, %65, %cst_46 {dimension_numbers = #tpu.dot_dimension_numbers<[1], [0], [0], [1], [0, 0, 1, 1], [], []>} : vector<32x144xbf16>, vector<144x256xbf16>, vector<32x256xf32> -> vector<32x256xf32>
    %c0_47 = arith.constant 0 : index
    %c0_48 = arith.constant 0 : index
    %c0_49 = arith.constant 0 : index
    %67 = vector.load %arg3[%c0_47, %c0_48, %c0_49] : memref<1x32x256xf32, #tpu.memory_space<vmem>>, vector<1x32x256xf32>
    %68 = vector.shape_cast %67 : vector<1x32x256xf32> to vector<32x256xf32>
    %69 = vector.shape_cast %66 : vector<32x256xf32> to vector<1x32x256xf32>
    tpu.vector_store %arg3[%c0_47, %c0_48, %c0_49], %69 {strides = array<i32>} : memref<1x32x256xf32, #tpu.memory_space<vmem>>, vector<1x32x256xf32>,
    %cst_50 = arith.constant dense<0.000000e+00> : vector<32xf32>
    %70 = vector.multi_reduction <add>, %66, %cst_50 [1] : vector<32x256xf32> to vector<32xf32>
    %71 = vector.shape_cast %70 : vector<32xf32> to vector<32x1xf32>
    %72 = vector.extract_strided_slice %71 {offsets = [0, 0], sizes = [8, 1], strides = [1, 1]} : vector<32x1xf32> to vector<8x1xf32>
    %73 = arith.addf %33, %72 : vector<8x1xf32>
    %74 = vector.extract_strided_slice %71 {offsets = [8, 0], sizes = [8, 1], strides = [1, 1]} : vector<32x1xf32> to vector<8x1xf32>
    %75 = arith.addf %73, %74 : vector<8x1xf32>
    %76 = vector.extract_strided_slice %71 {offsets = [16, 0], sizes = [8, 1], strides = [1, 1]} : vector<32x1xf32> to vector<8x1xf32>
    %77 = arith.addf %75, %76 : vector<8x1xf32>
    %78 = vector.extract_strided_slice %71 {offsets = [24, 0], sizes = [8, 1], strides = [1, 1]} : vector<32x1xf32> to vector<8x1xf32>
    %79 = arith.addf %77, %78 : vector<8x1xf32>
    %cst_51 = arith.constant 9.765625E-4 : f32
    %80 = vector.broadcast %cst_51 : f32 to vector<8x1xf32>
    %81 = arith.mulf %79, %80 : vector<8x1xf32>
    %cst_52 = arith.constant 0.000000e+00 : f32
    %82 = vector.broadcast %cst_52 : f32 to vector<8x1xf32>
    %c0_53 = arith.constant 0 : index
    %c0_54 = arith.constant 0 : index
    %c0_55 = arith.constant 0 : index
    %83 = vector.load %arg3[%c0_53, %c0_54, %c0_55] : memref<1x32x256xf32, #tpu.memory_space<vmem>>, vector<1x8x256xf32>
    %84 = vector.shape_cast %83 : vector<1x8x256xf32> to vector<8x256xf32>
    %85 = vector.broadcast %81 : vector<8x1xf32> to vector<8x256xf32>
    %86 = arith.subf %84, %85 : vector<8x256xf32>
    %87 = arith.mulf %86, %86 : vector<8x256xf32>
    %cst_56 = arith.constant dense<0.000000e+00> : vector<8xf32>
    %88 = vector.multi_reduction <add>, %87, %cst_56 [1] : vector<8x256xf32> to vector<8xf32>
    %89 = vector.shape_cast %88 : vector<8xf32> to vector<8x1xf32>
    %90 = arith.addf %82, %89 : vector<8x1xf32>
    %c0_57 = arith.constant 0 : index
    %c8_58 = arith.constant 8 : index
    %c0_59 = arith.constant 0 : index
    %91 = vector.load %arg3[%c0_57, %c8_58, %c0_59] : memref<1x32x256xf32, #tpu.memory_space<vmem>>, vector<1x8x256xf32>
    %92 = vector.shape_cast %91 : vector<1x8x256xf32> to vector<8x256xf32>
    %93 = vector.broadcast %81 : vector<8x1xf32> to vector<8x256xf32>
    %94 = arith.subf %92, %93 : vector<8x256xf32>
    %95 = arith.mulf %94, %94 : vector<8x256xf32>
    %cst_60 = arith.constant dense<0.000000e+00> : vector<8xf32>
    %96 = vector.multi_reduction <add>, %95, %cst_60 [1] : vector<8x256xf32> to vector<8xf32>
    %97 = vector.shape_cast %96 : vector<8xf32> to vector<8x1xf32>
    %98 = arith.addf %90, %97 : vector<8x1xf32>
    %c0_61 = arith.constant 0 : index
    %c16_62 = arith.constant 16 : index
    %c0_63 = arith.constant 0 : index
    %99 = vector.load %arg3[%c0_61, %c16_62, %c0_63] : memref<1x32x256xf32, #tpu.memory_space<vmem>>, vector<1x8x256xf32>
    %100 = vector.shape_cast %99 : vector<1x8x256xf32> to vector<8x256xf32>
    %101 = vector.broadcast %81 : vector<8x1xf32> to vector<8x256xf32>
    %102 = arith.subf %100, %101 : vector<8x256xf32>
    %103 = arith.mulf %102, %102 : vector<8x256xf32>
    %cst_64 = arith.constant dense<0.000000e+00> : vector<8xf32>
    %104 = vector.multi_reduction <add>, %103, %cst_64 [1] : vector<8x256xf32> to vector<8xf32>
    %105 = vector.shape_cast %104 : vector<8xf32> to vector<8x1xf32>
    %106 = arith.addf %98, %105 : vector<8x1xf32>
    %c0_65 = arith.constant 0 : index
    %c24 = arith.constant 24 : index
    %c0_66 = arith.constant 0 : index
    %107 = vector.load %arg3[%c0_65, %c24, %c0_66] : memref<1x32x256xf32, #tpu.memory_space<vmem>>, vector<1x8x256xf32>
    %108 = vector.shape_cast %107 : vector<1x8x256xf32> to vector<8x256xf32>
    %109 = vector.broadcast %81 : vector<8x1xf32> to vector<8x256xf32>
    %110 = arith.subf %108, %109 : vector<8x256xf32>
    %111 = arith.mulf %110, %110 : vector<8x256xf32>
    %cst_67 = arith.constant dense<0.000000e+00> : vector<8xf32>
    %112 = vector.multi_reduction <add>, %111, %cst_67 [1] : vector<8x256xf32> to vector<8xf32>
    %113 = vector.shape_cast %112 : vector<8xf32> to vector<8x1xf32>
    %114 = arith.addf %106, %113 : vector<8x1xf32>
    %115 = arith.mulf %81, %81 : vector<8x1xf32>
    %cst_68 = arith.constant 0.000000e+00 : f32
    %116 = vector.broadcast %cst_68 : f32 to vector<8x1xf32>
    %117 = arith.mulf %116, %115 : vector<8x1xf32>
    %118 = arith.subf %114, %117 : vector<8x1xf32>
    %cst_69 = arith.constant 9.765625E-4 : f32
    %119 = vector.broadcast %cst_69 : f32 to vector<8x1xf32>
    %120 = arith.mulf %118, %119 : vector<8x1xf32>
    %cst_70 = arith.constant 0.000000e+00 : f32
    %121 = vector.broadcast %cst_70 : f32 to vector<8x1xf32>
    %122 = arith.maximumf %120, %121 : vector<8x1xf32>
    %cst_71 = arith.constant 9.99999974E-6 : f32
    %123 = vector.broadcast %cst_71 : f32 to vector<8x1xf32>
    %124 = arith.addf %122, %123 : vector<8x1xf32>
    %125 = math.rsqrt %124 : vector<8x1xf32>
    %c0_72 = arith.constant 0 : index
    %c0_73 = arith.constant 0 : index
    %c0_74 = arith.constant 0 : index
    %126 = vector.load %arg3[%c0_72, %c0_73, %c0_74] : memref<1x32x256xf32, #tpu.memory_space<vmem>>, vector<1x8x256xf32>
    %127 = vector.shape_cast %126 : vector<1x8x256xf32> to vector<8x256xf32>
    %128 = vector.broadcast %81 : vector<8x1xf32> to vector<8x256xf32>
    %129 = arith.subf %127, %128 : vector<8x256xf32>
    %130 = vector.broadcast %125 : vector<8x1xf32> to vector<8x256xf32>
    %131 = arith.mulf %129, %130 : vector<8x256xf32>
    %cst_75 = arith.constant 0.000000e+00 : f32
    %132 = vector.broadcast %cst_75 : f32 to vector<8x256xf32>
    %133 = arith.cmpf oge, %131, %132 : vector<8x256xf32>
    %cst_76 = arith.constant 2.000000e-01 : f32
    %134 = vector.broadcast %cst_76 : f32 to vector<8x256xf32>
    %135 = arith.mulf %134, %131 : vector<8x256xf32>
    %136 = arith.select %133, %131, %135 : vector<8x256xi1>, vector<8x256xf32>
    %c0_77 = arith.constant 0 : index
    %c0_78 = arith.constant 0 : index
    %c0_79 = arith.constant 0 : index
    %137 = vector.load %arg3[%c0_77, %c0_78, %c0_79] : memref<1x32x256xf32, #tpu.memory_space<vmem>>, vector<1x8x256xf32>
    %138 = vector.shape_cast %137 : vector<1x8x256xf32> to vector<8x256xf32>
    %139 = vector.shape_cast %136 : vector<8x256xf32> to vector<1x8x256xf32>
    tpu.vector_store %arg3[%c0_77, %c0_78, %c0_79], %139 {strides = array<i32>} : memref<1x32x256xf32, #tpu.memory_space<vmem>>, vector<1x8x256xf32>,
    %c0_80 = arith.constant 0 : index
    %c8_81 = arith.constant 8 : index
    %c0_82 = arith.constant 0 : index
    %140 = vector.load %arg3[%c0_80, %c8_81, %c0_82] : memref<1x32x256xf32, #tpu.memory_space<vmem>>, vector<1x8x256xf32>
    %141 = vector.shape_cast %140 : vector<1x8x256xf32> to vector<8x256xf32>
    %142 = vector.broadcast %81 : vector<8x1xf32> to vector<8x256xf32>
    %143 = arith.subf %141, %142 : vector<8x256xf32>
    %144 = vector.broadcast %125 : vector<8x1xf32> to vector<8x256xf32>
    %145 = arith.mulf %143, %144 : vector<8x256xf32>
    %cst_83 = arith.constant 0.000000e+00 : f32
    %146 = vector.broadcast %cst_83 : f32 to vector<8x256xf32>
    %147 = arith.cmpf oge, %145, %146 : vector<8x256xf32>
    %cst_84 = arith.constant 2.000000e-01 : f32
    %148 = vector.broadcast %cst_84 : f32 to vector<8x256xf32>
    %149 = arith.mulf %148, %145 : vector<8x256xf32>
    %150 = arith.select %147, %145, %149 : vector<8x256xi1>, vector<8x256xf32>
    %c0_85 = arith.constant 0 : index
    %c8_86 = arith.constant 8 : index
    %c0_87 = arith.constant 0 : index
    %151 = vector.load %arg3[%c0_85, %c8_86, %c0_87] : memref<1x32x256xf32, #tpu.memory_space<vmem>>, vector<1x8x256xf32>
    %152 = vector.shape_cast %151 : vector<1x8x256xf32> to vector<8x256xf32>
    %153 = vector.shape_cast %150 : vector<8x256xf32> to vector<1x8x256xf32>
    tpu.vector_store %arg3[%c0_85, %c8_86, %c0_87], %153 {strides = array<i32>} : memref<1x32x256xf32, #tpu.memory_space<vmem>>, vector<1x8x256xf32>,
    %c0_88 = arith.constant 0 : index
    %c16_89 = arith.constant 16 : index
    %c0_90 = arith.constant 0 : index
    %154 = vector.load %arg3[%c0_88, %c16_89, %c0_90] : memref<1x32x256xf32, #tpu.memory_space<vmem>>, vector<1x8x256xf32>
    %155 = vector.shape_cast %154 : vector<1x8x256xf32> to vector<8x256xf32>
    %156 = vector.broadcast %81 : vector<8x1xf32> to vector<8x256xf32>
    %157 = arith.subf %155, %156 : vector<8x256xf32>
    %158 = vector.broadcast %125 : vector<8x1xf32> to vector<8x256xf32>
    %159 = arith.mulf %157, %158 : vector<8x256xf32>
    %cst_91 = arith.constant 0.000000e+00 : f32
    %160 = vector.broadcast %cst_91 : f32 to vector<8x256xf32>
    %161 = arith.cmpf oge, %159, %160 : vector<8x256xf32>
    %cst_92 = arith.constant 2.000000e-01 : f32
    %162 = vector.broadcast %cst_92 : f32 to vector<8x256xf32>
    %163 = arith.mulf %162, %159 : vector<8x256xf32>
    %164 = arith.select %161, %159, %163 : vector<8x256xi1>, vector<8x256xf32>
    %c0_93 = arith.constant 0 : index
    %c16_94 = arith.constant 16 : index
    %c0_95 = arith.constant 0 : index
    %165 = vector.load %arg3[%c0_93, %c16_94, %c0_95] : memref<1x32x256xf32, #tpu.memory_space<vmem>>, vector<1x8x256xf32>
    %166 = vector.shape_cast %165 : vector<1x8x256xf32> to vector<8x256xf32>
    %167 = vector.shape_cast %164 : vector<8x256xf32> to vector<1x8x256xf32>
    tpu.vector_store %arg3[%c0_93, %c16_94, %c0_95], %167 {strides = array<i32>} : memref<1x32x256xf32, #tpu.memory_space<vmem>>, vector<1x8x256xf32>,
    %c0_96 = arith.constant 0 : index
    %c24_97 = arith.constant 24 : index
    %c0_98 = arith.constant 0 : index
    %168 = vector.load %arg3[%c0_96, %c24_97, %c0_98] : memref<1x32x256xf32, #tpu.memory_space<vmem>>, vector<1x8x256xf32>
    %169 = vector.shape_cast %168 : vector<1x8x256xf32> to vector<8x256xf32>
    %170 = vector.broadcast %81 : vector<8x1xf32> to vector<8x256xf32>
    %171 = arith.subf %169, %170 : vector<8x256xf32>
    %172 = vector.broadcast %125 : vector<8x1xf32> to vector<8x256xf32>
    %173 = arith.mulf %171, %172 : vector<8x256xf32>
    %cst_99 = arith.constant 0.000000e+00 : f32
    %174 = vector.broadcast %cst_99 : f32 to vector<8x256xf32>
    %175 = arith.cmpf oge, %173, %174 : vector<8x256xf32>
    %cst_100 = arith.constant 2.000000e-01 : f32
    %176 = vector.broadcast %cst_100 : f32 to vector<8x256xf32>
    %177 = arith.mulf %176, %173 : vector<8x256xf32>
    %178 = arith.select %175, %173, %177 : vector<8x256xi1>, vector<8x256xf32>
    %c0_101 = arith.constant 0 : index
    %c24_102 = arith.constant 24 : index
    %c0_103 = arith.constant 0 : index
    %179 = vector.load %arg3[%c0_101, %c24_102, %c0_103] : memref<1x32x256xf32, #tpu.memory_space<vmem>>, vector<1x8x256xf32>
    %180 = vector.shape_cast %179 : vector<1x8x256xf32> to vector<8x256xf32>
    %181 = vector.shape_cast %178 : vector<8x256xf32> to vector<1x8x256xf32>
    tpu.vector_store %arg3[%c0_101, %c24_102, %c0_103], %181 {strides = array<i32>} : memref<1x32x256xf32, #tpu.memory_space<vmem>>, vector<1x8x256xf32>,
    return
  }
  func.func @transform_0(%arg0: i32) -> (i32, i32, i32) {
    %c0_i32 = arith.constant 0 : i32
    %c0_i32_0 = arith.constant 0 : i32
    %c0_i32_1 = arith.constant 0 : i32
    return %arg0, %c0_i32, %c0_i32_0 : i32, i32, i32
  }
  func.func @transform_1(%arg0: i32) -> (i32, i32) {
    %c0_i32 = arith.constant 0 : i32
    %c0_i32_0 = arith.constant 0 : i32
    %c0_i32_1 = arith.constant 0 : i32
    return %c0_i32, %c0_i32_0 : i32, i32
  }
  func.func @transform_2(%arg0: i32) -> (i32, i32, i32) {
    %c0_i32 = arith.constant 0 : i32
    %c0_i32_0 = arith.constant 0 : i32
    %c0_i32_1 = arith.constant 0 : i32
    return %arg0, %c0_i32, %c0_i32_0 : i32, i32, i32
  }
}

</mosaic_0001>

<bundles_post_ra>
// kernel: tpu_custom_call.1
= control target key start
LH: loop header
LB: loop body
LE: loop exit
PB: predicated region body
PF: predicated region fallthrough
CT: control target
= control target key end

     0   :  { %7 = vsyncpa [#allocation5], 0  ;;  %s1581_s0 = inlined_call_operand.hbm [shape: bf16[2,8,256], index: 0, kind: input, shape index: {}]   ;;  %s1582_s1 = inlined_call_operand.hbm [shape: bf16[32,144], index: 1, kind: input, shape index: {}]   ;;  %s1583_s2 = inlined_call_operand.hbm [shape: f32[2,32,256], index: 2, kind: output, shape index: {}]  }
   0x1   :  { %9 = vsyncpa [#allocation5 + $0x1], 0 }
   0x2   :  { %10 = vsyncpa [#allocation8], 0 }
   0x3   :  { %11 = vsyncpa [#allocation6], 0 }
   0x4   :  { %13 = vsyncpa [#allocation6 + $0x1], 0  ;;  %s1252_s9 = smov 0   ;;  %s1254_s10 = smov 0  }
   0x5   :  { %s1256_s11 = smov 0   ;;  %s1258_s12 = smov 0  }
   0x6 LB: > { %s1273_s13 = sadd.s32 4294967295, %s1214_s12   ;;  %s949_s14 = sadd.s32 4294967294, %s1214_s12   ;;  %s1214_s12 = sphi %s1258_s12, %s1617_s12   ;;  %s1210_s11 = sphi %s1256_s11, %s1616_s11   ;;  %s1206_s10 = sphi %s1254_s10, %s1615_s10   ;;  %s1202_s9 = sphi %s1252_s9, %s1614_s9  }
   0x7   : > { %p39_p0 = scmp.ne.s32.totalorder %s1206_s10, %s1202_s9  ;;  %p1584_p1 = scmp.eq.s32.totalorder %s1273_s13, 0 }
   0x8   : > { %p90_p3 = scmp.eq.s32.totalorder %s949_s14, 1  ;;  %p950_p5 = scmp.ge.s32.totalorder %s1214_s12, 1 }
   0x9   : > { %p1282_p4 = por %p1584_p1, %p39_p0  ;;  %p97_p7 = scmp.lt.s32.totalorder %s1214_s12, 3 }
   0xa   : > { %p1287_p6 = por %p90_p3, %p39_p0  ;;  %s1216_s18 = smov [#allocation7]  }
   0xb   : > { %s1588_s15 = scalar_select %p1282_p4, 1, 0 }
   0xc   : > { %s1589_s16 = scalar_select %p1287_p6, 1, 0 }
   0xd   : > { %p1292_p8 = pnand %p950_p5, %p97_p7  ;;  %s109_s19 = sshll.u32 %s1216_s18, 4  ;;  %s110_s19 = int_to_ptr.vmem [resolvable:$true] %s109_s19 }
   0xe   : > { %s1306_s21 = sadd.s32 1, %s1214_s12   ;;  %s26_s22 = sadd.s32 1, %s1210_s11 }
   0xf   : > { %s1590_s17 = scalar_select %p1292_p8, 1, 0 }
  0x10   : > { %p1017_p9 = pneg %p1292_p8  ;;  %s23_s23 = ssub.s32 %s1214_s12, %s1306_s21 }
  0x11   : > { %s1103_s24 = scalar_lea.vmem %s110_s19, 512  ;;  %p1111_p5 = scmp.lt.s32.totalorder %s110_s19, %s110_s19 }
  0x12   : > { %p1301_p11 = pnand %p1017_p9, %p1584_p1  ;;  %p1104_p13 = scmp.ne.s32.totalorder %s110_s19, %s1103_s24 }
  0x13   : > { %p1112_p7 = scmp.lt.s32.totalorder %s1103_s24, %s1103_s24 }
  0x14   : > { %p1094_p12 = pneg %p1301_p11 }
  0x15   : > { %p1113_p10 = por %p1112_p7, %p1111_p5 }
  0x16   : > { %p1106_p0 = pnand %p1104_p13, %p1094_p12 }
  0x18   : > { %p1107_p3 = pneg %p1106_p0 }
  0x1a   : > { %p1114_p2 = pnand %p1113_p10, %p1107_p3 }
  0x1c   : > { %1117 = shalt.err (!%p1114_p2)
}
  0x1d   : > { %s1217_s25 = smov 128   ;;  %s1218_s26 = smov 8  }
  0x1e   : > { %1020 = dma.hbm_to_vmem [thread:$0]  (!%p1301_p11), %s1582_s1, 512, %s110_s19, [#allocation8], %s1217_s25, %s1217_s25, %s1218_s26  }
  0x1f   : > { %p24_p9 = scmp.eq.s32.totalorder %s23_s23, 0  ;;  %p33_p12 = scmp.ne.s32.totalorder %s1210_s11, %s1206_s10 }
  0x20   : > { %p34_p10 = scmp.eq.s32.totalorder %s1214_s12, 0  ;;  %p1030_p2 = scmp.lt.s32.totalorder %s1214_s12, 2 }
  0x21   : > { %s1323_s29 = scalar_select %p24_p9, %s1210_s11, %s26_s22  }
  0x22   : > { %p35_p13 = por %p34_p10, %p33_p12  ;;  %p1592_p0 = scmp.eq.s32.totalorder %s1273_s13, 1 }
  0x23   : > { %s123_s3 = sand.u32 1, %s1210_s11   ;;  %s989_s4 = sshll.u32 %s1214_s12, 7 }
  0x24   : > { %p1327_p3 = por %p1592_p0, %p33_p12  ;;  %s953_s5 = sshll.u32 %s123_s3, 3 }
  0x25   : > { %s1336_s8 = scalar_lea.hbm %s1581_s0, %s989_s4  ;;  %s127_s14 = scalar_lea.vmem [#allocation4], %s953_s5 }
  0x26   : > { %s1593_s30 = scalar_select %p1327_p3, 1, 0 }
  0x27   : > { %s135_s18 = sshll.u32 %s127_s14, 4  ;;  %p1338_p11 = pnand %p1030_p2, %p35_p13  ;;  %s136_s18 = int_to_ptr.vmem [resolvable:$true] %s135_s18 }
  0x28   : > { %s124_s20 = scalar_lea.sflag [#allocation5], %s123_s3  ;;  %s1118_s22 = scalar_lea.hbm %s1336_s8, 128 }
  0x29   : > { %p1119_p5 = scmp.ne.s32.totalorder %s1336_s8, %s1118_s22  ;;  %p1120_p7 = pneg %p1338_p11 }
  0x2a   : > { %s1123_s25 = scalar_lea.hbm %s1581_s0, 256  ;;  %p1124_p10 = scmp.lt.s32.totalorder %s1336_s8, %s1581_s0 }
  0x2b   : > { %p1121_p9 = pnand %p1120_p7, %p1119_p5  ;;  %p1125_p2 = scmp.lt.s32.totalorder %s1123_s25, %s1118_s22 }
  0x2d   : > { %p1122_p12 = pneg %p1121_p9  ;;  %p1126_p13 = por %p1125_p2, %p1124_p10 }
  0x2f   : > { %p1127_p0 = pnand %p1126_p13, %p1122_p12 }
  0x31   : > { %1130 = shalt.err (!%p1127_p0)
}
  0x32   : > { %s1131_s28 = scalar_lea.vmem %s136_s18, 128  ;;  %s1219_s3 = smov [#allocation4]  }
  0x33   : > { %p1132_p1 = scmp.ne.s32.totalorder %s136_s18, %s1131_s28  ;;  %s1136_s4 = sshll.u32 %s1219_s3, 4  ;;  %s1137_s4 = int_to_ptr.vmem [resolvable:$false] %s1136_s4 }
  0x34   : > { %s1138_s5 = scalar_lea.vmem %s1137_s4, 256  ;;  %p1139_p5 = scmp.lt.s32.totalorder %s136_s18, %s1137_s4 }
  0x35   : > { %p1134_p6 = pnand %p1132_p1, %p1120_p7  ;;  %p1140_p9 = scmp.lt.s32.totalorder %s1138_s5, %s1131_s28 }
  0x37   : > { %p1135_p3 = pneg %p1134_p6  ;;  %p1141_p4 = por %p1140_p9, %p1139_p5 }
  0x39   : > { %p1142_p8 = pnand %p1141_p4, %p1135_p3 }
  0x3b   : > { %1145 = shalt.err (!%p1142_p8)
}
  0x3c   : > { %1024 = dma.hbm_to_vmem [thread:$0]  (!%p1338_p11), %s1336_s8, 128, %s136_s18, %s124_s20  }
  0x3d   : > { %p1595_p12 = scmp.ne.s32.totalorder %s1590_s17, 0 }
  0x3e   : > { %s1359_s6 = sand.u32 (!%p1595_p12), 1, %s1206_s10   ;;  %p1596_p1 = scmp.ne.s32.totalorder (!%p1595_p12), %s1588_s15, 0 }
  0x3f   : > { %144 = sbr.rel (%p1595_p12) target bundleno = 925 (0x39d), region = 28  ;;  %s957_s7 = sshll.u32 (!%p1595_p12), %s1359_s6, 3 }
  0x40   : > { %s147_s14 = scalar_lea.sflag (!%p1595_p12), [#allocation5], %s1359_s6  ;;  %s150_s22 = scalar_lea.vmem (!%p1595_p12), [#allocation4], %s957_s7 }
  0x44   : > { %1189 = dma.done.wait (%p1596_p1), %s147_s14, 128  }
  0x45   : > { %1191 = vsyncadd (%p1596_p1), %s147_s14, 4294967168  ;;  %p1597_p4 = scmp.eq.s32.totalorder %s1273_s13, 0 }
  0x47   : > { %1193 = dma.done.wait (%p1597_p4), [#allocation8], 512   ;;  %p1598_p6 = pmov %p1597_p4 }
  0x48   : > { %vm181_vm0 = vcmask 273544   ;;  %v201_v0 = vlaneseq  ;;  %vm178_vm1 = vcmask 134144   ;;  %v1220_v1 = vmov 0   ;;  %v187_v6 = vld [vmem:[%s150_s22] sm:$0xff]  ;;  %s1221_s15 = smov 17   ;;  %s1222_s17 = smov 18  }
  0x49   : > { %1195 = vsyncadd (%p1598_p6), [#allocation8], 4294966784  ;;  %183 = vst.msk [vmem:[#allocation2 + $0x14] sm:$0xf] %vm181_vm0, %v1220_v1  ;;  %vm185_vm2 = vcmask 273408   ;;  %189 = vrot.lane.b32.xlu0 %v187_v6, %s1221_s15  ;;  %s1223_s8 = smov 32  }
  0x4a   : > { %182 = vst.msk [vmem:[#allocation2 + $0x8] sm:$0xf] %vm181_vm0, %v1220_v1  ;;  %v202_v2 = vand.u32 127, %v201_v0  ;;  %s1224_s18 = smov 16   ;;  %s1225_s19 = smov 2   ;;  %vm196_vm9 = vcmask 1043592  }
  0x4b   : > { %179 = vst.msk [vmem:[#allocation2] sm:$0xf] %vm178_vm1, %v1220_v1  ;;  %s1226_s20 = smov 34   ;;  %s1227_s23 = smov 95   ;;  %vm197_vm10 = vcmask 1047556   ;;  %vm192_vm11 = vcmask 138240  }
  0x4c   : > { %186 = vst.msk [vmem:[#allocation2 + $0x14] sm:$0xf] %vm185_vm2, %v1220_v1  ;;  %v203_v3 = vadd.s32 128, %v202_v2  ;;  %v208_v4 = vand.u32 15, %v202_v2  ;;  %s1228_s24 = smov 111   ;;  %vm198_vm12 = vmor %vm197_vm10, %vm196_vm9  ;;  %vm396_vm13 = vcmask 146432  }
  0x4d   : > { %vm436_vm14 = vcmask 261120   ;;  %s1229_s25 = smov 96   ;;  %s1230_s26 = smov 110   ;;  %v1086_v62 = vld [vmem:[#allocation7 + $0x4] ss:$8 sps:$4 sm:$0xff]  }
  0x4e   : > { %v215_v5 = vand.u32 15, %v203_v3  ;;  %vm228_vm3 = vcmp.lt.s32.totalorder %v208_v4, 15  ;;  %vm1376_vm4 = vcmp.ge.s32.totalorder %v208_v4, 1  ;;  %s1231_s27 = smov 112   ;;  %s1232_s28 = smov 126  }
  0x4f   : > { %s1233_s3 = smov 127   ;;  %s1234_s4 = smov 94   ;;  %v1089_v2 = vld [vmem:[#allocation7 + $0x14] ss:$8 sps:$4 sm:$0xff]  }
  0x50   : > { %vm229_vm5 = vcmp.lt.s32.totalorder %v215_v5, 15  ;;  %vm1380_vm6 = vcmp.ge.s32.totalorder %v215_v5, 1  ;;  %s959_s5 = sshll.u32 %s1359_s6, 6  ;;  %s990_s7 = sshll.u32 %s1273_s13, 10 }
  0x51   : > { %vm281_vm7 = vmpackc.low %vm229_vm5, %vm228_vm3  ;;  %vm327_vm3 = vcmask 130048   ;;  %s174_s14 = scalar_lea.vmem [#allocation9], %s959_s5  ;;  %p1611_p3 = scmp.ne.s32.totalorder %s1593_s30, 0 }
  0x52   : > { %v282_v9 = vsel %vm281_vm7, 65537, %v1220_v1  ;;  %vm242_vm8 = vmpackc.low %vm1380_vm6, %vm1376_vm4  ;;  %vm286_vm7 = vcmask 15360   ;;  %982 = vmatprep.mubr.msk.bf16.mxu0 %vm327_vm3, %v1086_v62  ;;  %983 = vmatprep.mubr.msk.bf16.mxu1 %vm327_vm3, %v1089_v2  ;;  %s866_s22 = sshll.u32 %s174_s14, 4  ;;  %s1537_s22 = int_to_ptr.vmem [resolvable:$true] %s866_s22 }
  0x53   : > { %393 = vrot.lane.b32.xlu1 %v282_v9, %s1222_s17  ;;  %v323_v10 = vsel %vm242_vm8, 65537, %v1220_v1  ;;  %v472_v11 = vld [vmem:[#allocation2 + $0x14] sm:$0xf]  ;;  %s1533_s17 = scalar_lea.hbm %s1583_s2, %s990_s7 }
  0x54   : > { %433 = vrot.lane.b32.xlu0 %v323_v10, %s1223_s8  ;;  %v363_v12 = vld [vmem:[#allocation2 + $0x14] sm:$0xf]  ;;  %s853_s8 = scalar_lea.sflag [#allocation6], %s1359_s6 }
  0x55   : > { %v432_v20 = vld [vmem:[#allocation2 + $0x14] sm:$0xf] }
  0x56   : > { %v392_v25 = vld [vmem:[#allocation2 + $0x14] sm:$0xf] }
  0x57   : > { %324 = vrot.lane.b32.xlu1 %v323_v10, %s1224_s18  ;;  %v322_v31 = vld [vmem:[#allocation2 + $0x14] sm:$0xf] }
  0x58   : > { %283 = vrot.lane.b32.xlu0 %v282_v9, %s1225_s19  ;;  %v280_v36 = vld [vmem:[#allocation2 + $0x14] sm:$0xf]  ;;  %s1146_s19 = scalar_lea.vmem %s1537_s22, 1024 }
  0x59   : > { %v250_v58 = vld [vmem:[#allocation2 + $0x14] sm:$0xf]  ;;  %p1147_p8 = scmp.ne.s32.totalorder %s1537_s22, %s1146_s19 }
  0x5a   : > { %v501_v0 = vld [vmem:[#allocation2 + $0x14] sm:$0xf] }
  0x5b   : > { %502 = vrot.lane.b32.xlu1 %v282_v9, %s1226_s20  ;;  %p1148_p11 = pnand %p1147_p8, %p1611_p3  ;;  %s1235_s20 = smov [#allocation9]  }
  0x5c   : > { %481 = vrot.lane.b32.xlu0 %v1220_v1, %s1227_s23 }
  0x5d   : > { %p1149_p7 = pneg %p1148_p11 }
  0x5f   : > { %483 = vrot.lane.b32.xlu1 %v472_v11, %s1227_s23 }
  0x60   : > { %372 = vrot.lane.b32.xlu0 %v1220_v1, %s1228_s24 }
  0x63   : > { %374 = vrot.lane.b32.xlu1 %v363_v12, %s1228_s24 }
  0x64   : > { %452 = vrot.lane.b32.xlu0 %v1220_v1, %s1229_s25 }
  0x68   : > { %412 = vrot.lane.b32.xlu0 %v1220_v1, %s1230_s26 }
  0x6c   : > { %343 = vrot.lane.b32.xlu0 %v1220_v1, %s1231_s27 }
  0x70   : > { %302 = vrot.lane.b32.xlu0 %v1220_v1, %s1232_s28 }
  0xbb   : > { %v190_v13 = vpop.permute.xlu0 %189 }
  0xbc   : > { %v191_v14 = vrot.slane %v190_v13, 4 }
  0xbe   : > { %v193_v15 = vsel %vm192_vm11, %v191_v14, %v190_v13  ;;  %200 = vst.msk [vmem:[#allocation2 + $0x8] sm:$0xf] %vm178_vm1, %v191_v14 }
  0xbf   : > { %199 = vst.msk [vmem:[#allocation2] sm:$0xff] %vm198_vm12, %v193_v15  ;;  %vm505_vm12 = vcmask 277504  }
  0xc5   : > { %v394_v16 = vpop.permute.xlu1 %393  ;;  %v470_v40 = vld [vmem:[#allocation2 + $0x8] sm:$0xf] }
  0xc6   : > { %v395_v17 = vrot.slane %v394_v16, 4  ;;  %v434_v18 = vpop.permute.xlu0 %433  ;;  %v1441_v41 = vld [vmem:[#allocation2] sm:$0xff]  ;;  %v361_v42 = vld [vmem:[#allocation2 + $0x8] sm:$0xf] }
  0xc7   : > { %v435_v19 = vrot.slane %v434_v18, 4  ;;  %477 = vrot.lane.b32.xlu0 %v1441_v41, %s1227_s23  ;;  %v430_v43 = vld [vmem:[#allocation2 + $0x8] sm:$0xf] }
  0xc8   : > { %v397_v21 = vsel %vm396_vm13, %v395_v17, %v394_v16  ;;  %vm1407_vm0 = vcmp.ne.s16.totalorder %v395_v17, 0  ;;  %v390_v46 = vld [vmem:[#allocation2 + $0x8] sm:$0xf] }
  0xc9   : > { %v437_v22 = vsel %vm436_vm14, %v435_v19, %v434_v18  ;;  %v325_v23 = vpop.permute.xlu1 %324  ;;  %vm1403_vm15 = vcmp.ne.s16.totalorder %v435_v19, 0  ;;  %vm398_vm2 = vcmp.ne.s16.totalorder %v397_v21, 0  ;;  %v403_v30 = vsel %vm1407_vm0, %v392_v25, 0  ;;  %v320_v49 = vld [vmem:[#allocation2 + $0x8] sm:$0xf] }
  0xca   : > { %vm438_vm1 = vcmp.ne.s16.totalorder %v437_v22, 0  ;;  %v443_v27 = vsel %vm1403_vm15, %v432_v20, 0  ;;  %v326_v28 = vrot.slane %v325_v23, 4  ;;  %v284_v29 = vpop.permute.xlu0 %283  ;;  %v441_v44 = vsel %vm1403_vm15, %v430_v43, 0  ;;  %v278_v51 = vld [vmem:[#allocation2 + $0x8] sm:$0xf] }
  0xcb   : > { %454 = vrot.lane.b32.xlu1 %v443_v27, %s1229_s25  ;;  %v285_v33 = vrot.slane %v284_v29, 4  ;;  %368 = vrot.lane.b32.xlu0 %v1441_v41, %s1228_s24  ;;  %v440_v45 = vsel %vm438_vm1, %v1441_v41, 0  ;;  %v401_v47 = vsel %vm1407_vm0, %v390_v46, 0  ;;  %v400_v48 = vsel %vm398_vm2, %v1441_v41, 0  ;;  %v248_v56 = vld [vmem:[#allocation2 + $0x8] sm:$0xf] }
  0xcc   : > { %v328_v32 = vsel %vm327_vm3, %v326_v28, %v325_v23  ;;  %vm1420_vm5 = vcmp.ne.s16.totalorder %v326_v28, 0  ;;  %v499_v60 = vld [vmem:[#allocation2 + $0x8] sm:$0xf]  ;;  %vm267_vm15 = vcmask 1043456   ;;  %vm490_vm0 = vcmask 777216  }
  0xcd   : > { %v334_v35 = vsel %vm1420_vm5, %v322_v31, 0  ;;  %vm329_vm9 = vcmp.ne.s16.totalorder %v328_v32, 0  ;;  %v287_v37 = vsel %vm286_vm7, %v285_v33, %v284_v29  ;;  %vm1429_vm10 = vcmp.ne.s16.totalorder %v285_v33, 0  ;;  %v503_v52 = vpop.permute.xlu1 %502 }
  0xce   : > { %v293_v39 = vsel %vm1429_vm10, %v280_v36, 0  ;;  %vm288_vm11 = vcmp.ne.s16.totalorder %v287_v37, 0  ;;  %v332_v50 = vsel %vm1420_vm5, %v320_v49, 0  ;;  %v291_v53 = vsel %vm1429_vm10, %v278_v51, 0  ;;  %v482_v5 = vpop.permute.xlu0 %481 }
  0xcf   : > { %414 = vrot.lane.b32.xlu1 %v403_v30, %s1230_s26  ;;  %448 = vrot.lane.b32.xlu0 %v440_v45, %s1229_s25  ;;  %v331_v54 = vsel %vm329_vm9, %v1441_v41, 0  ;;  %v504_v55 = vrot.slane %v503_v52, 4  ;;  %v290_v57 = vsel %vm288_vm11, %v1441_v41, 0  ;;  %v487_v19 = vrot.slane %v482_v5, 4 }
  0xd0   : > { %vm461_vm1 = vcmask 785408   ;;  %vm421_vm2 = vcmask 900096   ;;  %vm381_vm3 = vcmask 908288   ;;  %vm352_vm5 = vcmask 916480  }
  0xd1   : > { %v506_v59 = vsel %vm505_vm12, %v504_v55, %v503_v52  ;;  %vm508_vm13 = vcmp.ne.s16.totalorder %v504_v55, 0  ;;  %v484_v4 = vpop.permute.xlu1 %483  ;;  %vm311_vm7 = vcmask 1031168   ;;  %vm269_vm9 = vcmask 1039360  }
  0xd2   : > { %vm507_vm14 = vcmp.ne.s16.totalorder %v506_v59, 0  ;;  %v510_v61 = vsel %vm508_vm13, %v499_v60, 0  ;;  %v512_v3 = vsel %vm508_vm13, %v501_v0, 0  ;;  %v1478_v9 = vpop.permute.xlu0 %372  ;;  %v488_v18 = vrot.slane %v484_v4, 4 }
  0xd3   : > { %345 = vrot.lane.b32.xlu1 %v334_v35, %s1231_s27  ;;  %408 = vrot.lane.b32.xlu0 %v400_v48, %s1230_s26  ;;  %v509_v63 = vsel %vm507_vm14, %v1441_v41, 0  ;;  %v378_v45 = vrot.slane %v1478_v9, 4  ;;  %vm530_vm10 = vcmask 769024  }
  0xd4   : > { %v492_v23 = vsel %vm267_vm15, %v487_v19, %v488_v18 }
  0xd5   : > { %v375_v6 = vpop.permute.xlu1 %374  ;;  %v493_v27 = vsel %vm490_vm0, %v482_v5, %v492_v23 }
  0xd6   : > { %v453_v11 = vpop.permute.xlu0 %452 }
  0xd7   : > { %304 = vrot.lane.b32.xlu1 %v293_v39, %s1232_s28  ;;  %255 = vrot.lane.b32.xlu0 %v1441_v41, %s1233_s3  ;;  %v458_v31 = vrot.slane %v453_v11, 4 }
  0xda   : > { %v413_v13 = vpop.permute.xlu0 %412 }
  0xdb   : > { %479 = vrot.lane.b32.xlu1 %v470_v40, %s1227_s23  ;;  %339 = vrot.lane.b32.xlu0 %v331_v54, %s1231_s27  ;;  %v418_v36 = vrot.slane %v413_v13, 4  ;;  %s1150_s23 = sshll.u32 %s1235_s20, 4  ;;  %s1151_s23 = int_to_ptr.vmem [resolvable:$false] %s1150_s23 }
  0xdc   : > { %p1153_p10 = scmp.lt.s32.totalorder %s1537_s22, %s1151_s23 }
  0xde   : > { %v1482_v15 = vpop.permute.xlu0 %343 }
  0xdf   : > { %370 = vrot.lane.b32.xlu1 %v361_v42, %s1228_s24  ;;  %298 = vrot.lane.b32.xlu0 %v290_v57, %s1232_s28  ;;  %v349_v2 = vrot.slane %v1482_v15, 4  ;;  %s1152_s24 = scalar_lea.vmem %s1151_s23, 2048 }
  0xe0   : > { %p1154_p2 = scmp.lt.s32.totalorder %s1152_s24, %s1146_s19 }
  0xe2   : > { %v1486_v17 = vpop.permute.xlu0 %302  ;;  %p1155_p13 = por %p1154_p2, %p1153_p10 }
  0xe3   : > { %450 = vrot.lane.b32.xlu1 %v441_v44, %s1229_s25  ;;  %259 = vrot.lane.b32.xlu0 %v1220_v1, %s1233_s3  ;;  %v379_v44 = vrot.slane %v375_v6, 4 }
  0xe4   : > { %p1156_p0 = pnand %p1155_p13, %p1149_p7 }
  0xe5   : > { %v383_v57 = vsel %vm267_vm15, %v378_v45, %v379_v44  ;;  %v243_v45 = vsel %vm242_vm8, %v1441_v41, 0 }
  0xe6   : > { %v384_v5 = vsel %vm381_vm3, %v1478_v9, %v383_v57  ;;  %v964_v7 = vcombine.low %v243_v45, %v1220_v1 }
  0xe7   : > { %410 = vrot.lane.b32.xlu1 %v401_v47, %s1230_s26  ;;  %517 = vrot.lane.b32.xlu0 %v509_v63, %s1234_s4 }
  0xeb   : > { %341 = vrot.lane.b32.xlu1 %v332_v50, %s1231_s27  ;;  %521 = vrot.lane.b32.xlu0 %v1220_v1, %s1234_s4 }
  0xef   : > { %300 = vrot.lane.b32.xlu1 %v291_v53, %s1232_s28 }
  0xf3   : > { %257 = vrot.lane.b32.xlu1 %v248_v56, %s1233_s3 }
  0xf7   : > { %261 = vrot.lane.b32.xlu1 %v250_v58, %s1233_s3 }
  0xfb   : > { %519 = vrot.lane.b32.xlu1 %v510_v61, %s1234_s4 }
  0xff   : > { %523 = vrot.lane.b32.xlu1 %v512_v3, %s1234_s4 }
 0x139   : > { %v478_v22 = vpop.permute.xlu0 %477 }
 0x13a   : > { %v485_v24 = vrot.slane %v478_v22, 4 }
 0x13d   : > { %v455_v10 = vpop.permute.xlu1 %454  ;;  %v369_v29 = vpop.permute.xlu0 %368 }
 0x13e   : > { %v459_v30 = vrot.slane %v455_v10, 4  ;;  %v376_v42 = vrot.slane %v369_v29, 4 }
 0x140   : > { %v463_v39 = vsel %vm267_vm15, %v458_v31, %v459_v30 }
 0x141   : > { %v415_v12 = vpop.permute.xlu1 %414  ;;  %v449_v38 = vpop.permute.xlu0 %448  ;;  %v464_v48 = vsel %vm461_vm1, %v453_v11, %v463_v39 }
 0x142   : > { %v419_v35 = vrot.slane %v415_v12, 4  ;;  %v456_v43 = vrot.slane %v449_v38, 4  ;;  %v308_v12 = vrot.slane %v1486_v17, 4 }
 0x144   : > { %v423_v49 = vsel %vm267_vm15, %v418_v36, %v419_v35 }
 0x145   : > { %v1480_v14 = vpop.permute.xlu1 %345  ;;  %v409_v52 = vpop.permute.xlu0 %408  ;;  %v424_v60 = vsel %vm421_vm2, %v413_v13, %v423_v49 }
 0x146   : > { %v416_v56 = vrot.slane %v409_v52, 4  ;;  %v350_v0 = vrot.slane %v1480_v14, 4 }
 0x148   : > { %v354_v14 = vsel %vm267_vm15, %v349_v2, %v350_v0 }
 0x149   : > { %v1484_v16 = vpop.permute.xlu1 %304  ;;  %v256_v63 = vpop.permute.xlu0 %255 }
 0x14a   : > { %v309_v11 = vrot.slane %v1484_v16, 4  ;;  %v263_v30 = vrot.slane %v256_v63, 4 }
 0x14c   : > { %v313_v16 = vsel %vm267_vm15, %v308_v12, %v309_v11 }
 0x14d   : > { %v480_v20 = vpop.permute.xlu1 %479  ;;  %v340_v13 = vpop.permute.xlu0 %339 }
 0x14e   : > { %v486_v21 = vrot.slane %v480_v20, 4  ;;  %v347_v19 = vrot.slane %v340_v13, 4 }
 0x150   : > { %v489_v25 = vsel %vm267_vm15, %v485_v24, %v486_v21 }
 0x151   : > { %v371_v26 = vpop.permute.xlu1 %370  ;;  %v491_v28 = vsel %vm490_vm0, %v478_v22, %v489_v25  ;;  %v355_v22 = vsel %vm352_vm5, %v1482_v15, %v354_v14  ;;  %v299_v25 = vpop.permute.xlu0 %298  ;;  %v314_v15 = vsel %vm311_vm7, %v1486_v17, %v313_v16 }
 0x152   : > { %v979_v32 = vcombine.high %v491_v28, %v493_v27  ;;  %v978_v33 = vcombine.low %v491_v28, %v493_v27  ;;  %v377_v40 = vrot.slane %v371_v26, 4 }
 0x154   : > { %675 = vmatprep.subr.bf16.mxu0 %v979_v32  ;;  %991 = vmatprep.subr.bf16.mxu1 %v979_v32  ;;  %v380_v53 = vsel %vm267_vm15, %v376_v42, %v377_v40 }
 0x155   : > { %v451_v34 = vpop.permute.xlu1 %450  ;;  %676 = vmatpush1.bf16.msra.mxu0 %v978_v33  ;;  %1000 = vmatpush1.bf16.msra.mxu1 %v978_v33  ;;  %v382_v61 = vsel %vm381_vm3, %v369_v29, %v380_v53  ;;  %v306_v29 = vrot.slane %v299_v25, 4  ;;  %v260_v35 = vpop.permute.xlu0 %259 }
 0x156   : > { %v457_v37 = vrot.slane %v451_v34, 4  ;;  %v973_v6 = vcombine.high %v382_v61, %v384_v5  ;;  %v972_v20 = vcombine.low %v382_v61, %v384_v5  ;;  %v265_v39 = vrot.slane %v260_v35, 4 }
 0x158   : > { %v460_v46 = vsel %vm267_vm15, %v456_v43, %v457_v37 }
 0x159   : > { %v411_v47 = vpop.permute.xlu1 %410  ;;  %v462_v50 = vsel %vm461_vm1, %v449_v38, %v460_v46  ;;  %v518_v17 = vpop.permute.xlu0 %517 }
 0x15a   : > { %v417_v51 = vrot.slane %v411_v47, 4  ;;  %v976_v54 = vcombine.low %v462_v50, %v464_v48  ;;  %v977_v55 = vcombine.high %v462_v50, %v464_v48  ;;  %v525_v49 = vrot.slane %v518_v17, 4 }
 0x15c   : > { %v420_v58 = vsel %vm267_vm15, %v416_v56, %v417_v51  ;;  %677 = vmatprep.subr.bf16.mxu0 %v977_v55  ;;  %992 = vmatprep.subr.bf16.mxu1 %v977_v55  ;;  %v965_v51 = vcombine.high %v243_v45, %v1220_v1 }
 0x15d   : > { %v342_v59 = vpop.permute.xlu1 %341  ;;  %v422_v62 = vsel %vm421_vm2, %v409_v52, %v420_v58  ;;  %678 = vmatpush1.bf16.msra.mxu0 %v976_v54  ;;  %1001 = vmatpush1.bf16.msra.mxu1 %v976_v54  ;;  %v522_v53 = vpop.permute.xlu0 %521 }
 0x15e   : > { %v974_v3 = vcombine.low %v422_v62, %v424_v60  ;;  %v975_v4 = vcombine.high %v422_v62, %v424_v60  ;;  %v348_v18 = vrot.slane %v342_v59, 4  ;;  %v527_v54 = vrot.slane %v522_v53, 4  ;;  %v1084_v59 = vld [vmem:[#allocation7] ss:$8 sps:$4 sm:$0xff]   ;;  %v1087_v60 = vld [vmem:[#allocation7 + $0x10] ss:$8 sps:$4 sm:$0xff]  }
 0x160   : > { %679 = vmatprep.subr.bf16.mxu0 %v975_v4  ;;  %993 = vmatprep.subr.bf16.mxu1 %v975_v4  ;;  %v351_v9 = vsel %vm267_vm15, %v347_v19, %v348_v18 }
 0x161   : > { %v301_v10 = vpop.permute.xlu1 %300  ;;  %680 = vmatpush1.bf16.msra.mxu0 %v974_v3  ;;  %1002 = vmatpush1.bf16.msra.mxu1 %v974_v3  ;;  %v353_v24 = vsel %vm352_vm5, %v340_v13, %v351_v9 }
 0x162   : > { %681 = vmatprep.subr.bf16.mxu0 %v973_v6  ;;  %994 = vmatprep.subr.bf16.mxu1 %v973_v6  ;;  %v307_v23 = vrot.slane %v301_v10, 4  ;;  %v970_v26 = vcombine.low %v353_v24, %v355_v22  ;;  %v971_v27 = vcombine.high %v353_v24, %v355_v22 }
 0x164   : > { %v310_v31 = vsel %vm267_vm15, %v306_v29, %v307_v23 }
 0x165   : > { %v258_v21 = vpop.permute.xlu1 %257  ;;  %682 = vmatpush1.bf16.msra.mxu0 %v972_v20  ;;  %1003 = vmatpush1.bf16.msra.mxu1 %v972_v20  ;;  %v312_v33 = vsel %vm311_vm7, %v299_v25, %v310_v31 }
 0x166   : > { %v264_v28 = vrot.slane %v258_v21, 4  ;;  %683 = vmatprep.subr.bf16.mxu0 %v971_v27  ;;  %995 = vmatprep.subr.bf16.mxu1 %v971_v27  ;;  %v968_v37 = vcombine.low %v312_v33, %v314_v15  ;;  %v969_v38 = vcombine.high %v312_v33, %v314_v15 }
 0x168   : > { %v268_v36 = vsel %vm267_vm15, %v263_v30, %v264_v28 }
 0x169   : > { %v262_v32 = vpop.permute.xlu1 %261  ;;  %684 = vmatpush1.bf16.msra.mxu0 %v970_v26  ;;  %1004 = vmatpush1.bf16.msra.mxu1 %v970_v26  ;;  %v270_v43 = vsel %vm269_vm9, %v256_v63, %v268_v36 }
 0x16a   : > { %v266_v34 = vrot.slane %v262_v32, 4  ;;  %685 = vmatprep.subr.bf16.mxu0 %v969_v38  ;;  %996 = vmatprep.subr.bf16.mxu1 %v969_v38 }
 0x16c   : > { %v271_v40 = vsel %vm267_vm15, %v265_v39, %v266_v34 }
 0x16d   : > { %v520_v42 = vpop.permute.xlu1 %519  ;;  %v272_v44 = vsel %vm269_vm9, %v260_v35, %v271_v40  ;;  %686 = vmatpush1.bf16.msra.mxu0 %v968_v37  ;;  %1005 = vmatpush1.bf16.msra.mxu1 %v968_v37 }
 0x16e   : > { %v966_v46 = vcombine.low %v270_v43, %v272_v44  ;;  %v967_v47 = vcombine.high %v270_v43, %v272_v44  ;;  %v526_v48 = vrot.slane %v520_v42, 4 }
 0x170   : > { %687 = vmatprep.subr.bf16.mxu0 %v967_v47  ;;  %997 = vmatprep.subr.bf16.mxu1 %v967_v47  ;;  %v529_v8 = vsel %vm267_vm15, %v525_v49, %v526_v48 }
 0x171   : > { %v524_v50 = vpop.permute.xlu1 %523  ;;  %688 = vmatpush1.bf16.msra.mxu0 %v966_v46  ;;  %1006 = vmatpush1.bf16.msra.mxu1 %v966_v46  ;;  %v531_v55 = vsel %vm530_vm10, %v518_v17, %v529_v8 }
 0x172   : > { %v528_v52 = vrot.slane %v524_v50, 4  ;;  %689 = vmatprep.subr.bf16.mxu0 %v965_v51  ;;  %998 = vmatprep.subr.bf16.mxu1 %v965_v51 }
 0x174   : > { %v532_v41 = vsel %vm267_vm15, %v527_v54, %v528_v52 }
 0x175   : > { %v533_v56 = vsel %vm530_vm10, %v522_v53, %v532_v41  ;;  %690 = vmatpush1.bf16.msra.mxu0 %v964_v7  ;;  %1007 = vmatpush1.bf16.msra.mxu1 %v964_v7 }
 0x176   : > { %v980_v57 = vcombine.low %v531_v55, %v533_v56  ;;  %v981_v58 = vcombine.high %v531_v55, %v533_v56 }
 0x178   : > { %705 = vmatprep.subr.bf16.mxu0 %v981_v58  ;;  %999 = vmatprep.subr.bf16.mxu1 %v981_v58 }
 0x179   : > { %706 = vmatpush2.bf16.msra.mxu0 %v980_v57  ;;  %1008 = vmatpush2.bf16.msra.mxu1 %v980_v57 }
 0x17c   : > { %708 = vmatmul.mubr.bf16.vlgmr.msra.gmra.mxu0 %v1084_v59  ;;  %718 = vmatmul.mubr.bf16.vlgmr.msra.gmra.mxu1 %v1087_v60 }
 0x23c   : > { %v709_v61 = vpop.f32.mrf.mxu0  ;;  %v719_v62 = vpop.f32.mrf.mxu1 }
 0x23e   : > { %v711_v63 = vpop.f32.mrf.mxu0  ;;  %v721_v1 = vpop.f32.mrf.mxu1 }
 0x23f   : > { %v736_v0 = vadd.f32 %v711_v63, %v709_v61  ;;  %v742_v6 = vadd.f32 %v721_v1, %v719_v62 }
 0x240   : > { %v713_v2 = vpop.f32.mrf.mxu0  ;;  %v723_v3 = vpop.f32.mrf.mxu1 }
 0x241   : > { %737 = vadd.xlane.f32.xlu0 %v736_v0 }
 0x242   : > { %v715_v4 = vpop.f32.mrf.mxu0  ;;  %v725_v10 = vpop.f32.mrf.mxu1 }
 0x243   : > { %v739_v5 = vadd.f32 %v715_v4, %v713_v2  ;;  %v745_v11 = vadd.f32 %v725_v10, %v723_v3 }
 0x245   : > { %743 = vadd.xlane.f32.xlu0 %v742_v6  ;;  %740 = vadd.xlane.f32.xlu1 %v739_v5 }
 0x249   : > { %746 = vadd.xlane.f32.xlu0 %v745_v11 }
 0x2ca   : > { %v738_v12 = vpop.xlane.xlu0 %737 }
 0x2ce   : > { %v744_v13 = vpop.xlane.xlu0 %743  ;;  %v741_v14 = vpop.xlane.xlu1 %740 }
 0x2cf   : > { %v749_v18 = vadd.f32 %v741_v14, %v738_v12 }
 0x2d1   : > { %v750_v19 = vadd.f32 %v749_v18, %v744_v13 }
 0x2d2   : > { %v747_v20 = vpop.xlane.xlu0 %746 }
 0x2d3   : > { %v751_v9 = vadd.f32 %v750_v19, %v747_v20 }
 0x2d5   : > { %v752_v21 = vmul.f32 0.0009765625, %v751_v9 }
 0x2d7   : > { %v755_v22 = vsub.f32 %v709_v61, %v752_v21  ;;  %v756_v16 = vsub.f32 %v711_v63, %v752_v21  ;;  %v765_v23 = vsub.f32 %v713_v2, %v752_v21  ;;  %v766_v24 = vsub.f32 %v715_v4, %v752_v21 }
 0x2d8   : > { %v775_v25 = vsub.f32 %v719_v62, %v752_v21  ;;  %v776_v26 = vsub.f32 %v721_v1, %v752_v21  ;;  %v785_v27 = vsub.f32 %v723_v3, %v752_v21  ;;  %v786_v28 = vsub.f32 %v725_v10, %v752_v21 }
 0x2d9   : > { %v757_v29 = vmul.f32 %v755_v22, %v755_v22  ;;  %v758_v30 = vmul.f32 %v756_v16, %v756_v16  ;;  %v767_v31 = vmul.f32 %v765_v23, %v765_v23  ;;  %v768_v32 = vmul.f32 %v766_v24, %v766_v24 }
 0x2da   : > { %v777_v15 = vmul.f32 %v775_v25, %v775_v25  ;;  %v778_v33 = vmul.f32 %v776_v26, %v776_v26  ;;  %v787_v36 = vmul.f32 %v785_v27, %v785_v27  ;;  %v788_v37 = vmul.f32 %v786_v28, %v786_v28 }
 0x2db   : > { %v759_v34 = vadd.f32 %v758_v30, %v757_v29  ;;  %v769_v35 = vadd.f32 %v768_v32, %v767_v31  ;;  %v793_v44 = vmul.f32 %v752_v21, %v752_v21 }
 0x2dc   : > { %v779_v38 = vadd.f32 %v778_v33, %v777_v15  ;;  %v789_v39 = vadd.f32 %v788_v37, %v787_v36 }
 0x2dd   : > { %760 = vadd.xlane.f32.xlu1 %v759_v34  ;;  %770 = vadd.xlane.f32.xlu0 %v769_v35  ;;  %v794_v47 = vmul.f32 0.0, %v793_v44 }
 0x2e1   : > { %780 = vadd.xlane.f32.xlu1 %v779_v38  ;;  %790 = vadd.xlane.f32.xlu0 %v789_v39 }
 0x366   : > { %v761_v40 = vpop.xlane.xlu1 %760  ;;  %v771_v42 = vpop.xlane.xlu0 %770 }
 0x367   : > { %v772_v43 = vadd.f32 %v771_v42, %v761_v40 }
 0x36a   : > { %v781_v17 = vpop.xlane.xlu1 %780  ;;  %v791_v46 = vpop.xlane.xlu0 %790 }
 0x36b   : > { %v782_v45 = vadd.f32 %v781_v17, %v772_v43 }
 0x36d   : > { %v792_v48 = vadd.f32 %v791_v46, %v782_v45 }
 0x36f   : > { %v795_v49 = vsub.f32 %v792_v48, %v794_v47 }
 0x371   : > { %v796_v50 = vmul.f32 0.0009765625, %v795_v49 }
 0x373   : > { %v797_v51 = vmax.f32 %v796_v50, 0.0 }
 0x375   : > { %v798_v52 = vadd.f32 1e-05, %v797_v51 }
 0x377   : > { %1090 = vrsqrt.f32 %v798_v52 }
 0x384   : > { %v1091_v53 = vpop.eup %1090 }
 0x385   : > { %v800_v8 = vmul.f32 %v1091_v53, %v755_v22  ;;  %v801_v54 = vmul.f32 %v1091_v53, %v756_v16  ;;  %v814_v7 = vmul.f32 %v1091_v53, %v765_v23  ;;  %v815_v41 = vmul.f32 %v1091_v53, %v766_v24 }
 0x386   : > { %v828_v55 = vmul.f32 %v1091_v53, %v775_v25  ;;  %v829_v56 = vmul.f32 %v1091_v53, %v776_v26  ;;  %v842_v57 = vmul.f32 %v1091_v53, %v785_v27  ;;  %v843_v58 = vmul.f32 %v1091_v53, %v786_v28 }
 0x387   : > { %vm802_vm4 = vcmp.ge.f32.partialorder %v800_v8, 0.0  ;;  %vm803_vm6 = vcmp.ge.f32.partialorder %v801_v54, 0.0  ;;  %v804_v59 = vmul.f32 0.2, %v800_v8  ;;  %v805_v60 = vmul.f32 0.2, %v801_v54 }
 0x388   : > { %vm816_vm8 = vcmp.ge.f32.partialorder %v814_v7, 0.0  ;;  %vm817_vm11 = vcmp.ge.f32.partialorder %v815_v41, 0.0  ;;  %v818_v61 = vmul.f32 0.2, %v814_v7  ;;  %v819_v62 = vmul.f32 0.2, %v815_v41 }
 0x389   : > { %v806_v63 = vsel %vm802_vm4, %v800_v8, %v804_v59  ;;  %v807_v1 = vsel %vm803_vm6, %v801_v54, %v805_v60  ;;  %vm830_vm12 = vcmp.ge.f32.partialorder %v828_v55, 0.0  ;;  %vm831_vm13 = vcmp.ge.f32.partialorder %v829_v56, 0.0 }
 0x38a   : > { %808 = vst [vmem:[%s174_s14] sm:$0xff] %v806_v63  ;;  %809 = vst [vmem:[%s174_s14 + $0x8] sm:$0xff] %v807_v1  ;;  %v820_v0 = vsel %vm816_vm8, %v814_v7, %v818_v61  ;;  %v821_v2 = vsel %vm817_vm11, %v815_v41, %v819_v62  ;;  %v832_v3 = vmul.f32 0.2, %v828_v55  ;;  %v833_v4 = vmul.f32 0.2, %v829_v56 }
 0x38b   : > { %822 = vst [vmem:[%s174_s14 + $0x10] sm:$0xff] %v820_v0  ;;  %823 = vst [vmem:[%s174_s14 + $0x18] sm:$0xff] %v821_v2  ;;  %vm844_vm14 = vcmp.ge.f32.partialorder %v842_v57, 0.0  ;;  %vm845_vm15 = vcmp.ge.f32.partialorder %v843_v58, 0.0  ;;  %v846_v5 = vmul.f32 0.2, %v842_v57 }
 0x38c   : > { %v847_v6 = vmul.f32 0.2, %v843_v58  ;;  %v834_v10 = vsel %vm830_vm12, %v828_v55, %v832_v3  ;;  %v835_v11 = vsel %vm831_vm13, %v829_v56, %v833_v4 }
 0x38d   : > { %836 = vst [vmem:[%s174_s14 + $0x20] sm:$0xff] %v834_v10  ;;  %837 = vst [vmem:[%s174_s14 + $0x28] sm:$0xff] %v835_v11  ;;  %v848_v12 = vsel %vm844_vm14, %v842_v57, %v846_v5 }
 0x38e   : > { %v849_v13 = vsel %vm845_vm15, %v843_v58, %v847_v6  ;;  %850 = vst [vmem:[%s174_s14 + $0x30] sm:$0xff] %v848_v12 }
 0x38f   : > { %851 = vst [vmem:[%s174_s14 + $0x38] sm:$0xff] %v849_v13 }
 0x390   : > { %1159 = shalt.err (!%p1156_p0)
}
 0x391   : > { %s1160_s25 = scalar_lea.hbm %s1533_s17, 1024  ;;  %s1164_s28 = scalar_lea.hbm %s1583_s2, 2048 }
 0x392   : > { %p1161_p5 = scmp.ne.s32.totalorder %s1533_s17, %s1160_s25  ;;  %p1165_p1 = scmp.lt.s32.totalorder %s1533_s17, %s1583_s2 }
 0x393   : > { %p1166_p4 = scmp.lt.s32.totalorder %s1164_s28, %s1160_s25 }
 0x394   : > { %p1162_p9 = pnand %p1161_p5, %p1611_p3 }
 0x395   : > { %p1167_p6 = por %p1166_p4, %p1165_p1 }
 0x396   : > { %p1163_p12 = pneg %p1162_p9 }
 0x398   : > { %p1168_p8 = pnand %p1167_p6, %p1163_p12 }
 0x39a   : > { %1171 = shalt.err (!%p1168_p8)
}
 0x39b   : > { %s1236_s5 = smov 256  }
 0x39c   : > { %1015 = dma.vmem_to_hbm [thread:$0]  (%p1611_p3), %s1537_s22, 1024, %s1533_s17, %s853_s8, %s1236_s5, %s1236_s5, %s1224_s18  }
 0x39d PF: > { %s881_s7 = sand.u32 1, %s1202_s9   ;;  %p1612_p11 = scmp.ne.s32.totalorder %s1589_s16, 0 }
 0x39e   : > { %p1613_p7 = scmp.ge.s32.totalorder %s1214_s12, 2  ;;  %s882_s14 = scalar_lea.sflag [#allocation6], %s881_s7 }
 0x3a0   : > { %p1026_p10 = pnand %p1613_p7, %p1612_p11 }
 0x3a2   : > { %p1027_p2 = pneg %p1026_p10 }
 0x3a4   : > { %1197 = dma.done.wait (%p1027_p2), %s882_s14, 1024  }
 0x3a5   : > { %1199 = vsyncadd (%p1027_p2), %s882_s14, 4294966272  ;;  %p16_p13 = scmp.ge.s32.totalorder %s1306_s21, 4   ;;  %s1614_s9 = smov %s1206_s10 }
 0x3a6   : > { %s1615_s10 = smov %s1210_s11  ;;  %s1616_s11 = smov %s1323_s29 }
 0x3a7   : > { %s1617_s12 = smov %s1306_s21  ;;  %18 = sbr.rel (!%p16_p13) target bundleno = 6 (0x6), region = 77 }
 0x3ac   :  { %887 = vsyncpa [#allocation5], 1 }
 0x3ad   :  { %889 = vsyncpa [#allocation5 + $0x1], 1 }
 0x3ae   :  { %890 = vsyncpa [#allocation8], 1 }
 0x3af   :  { %891 = vsyncpa [#allocation6], 1 }
 0x3b0   :  { %893 = vsyncpa [#allocation6 + $0x1], 1 }

</bundles_post_ra>
